<compile_context>
chip_gen: v6e
topology: v6e:2x2x1
jax: 0.10.0
libtpu: 0.0.40
codegen_flags: <defaults>
</compile_context>

<pallas_src>
import math
from functools import partial

import jax
import jax.numpy as jnp
from jax import lax
from jax.experimental import pallas as pl
from jax.experimental.pallas import tpu as pltpu


_SQRT_HALF = 1.0 / math.sqrt(2.0)


def _round_up(x, m):
    return (x + m - 1) // m * m


def _gelu_exact(x):
    # PyTorch nn.GELU() default: exact erf-based GELU (VPU polynomial, f32).
    return 0.5 * x * (1.0 + lax.erf(x * _SQRT_HALF))


# ---------------------------------------------------------------------------
# Kernel: one weight-resident MXU matmul + bias + GELU per batch tile.
# ---------------------------------------------------------------------------
def memory_kernel(x_ref, w_ref, b_ref, o_ref, *, approximate_gelu: bool):
    # x: (tm, S) f32 | w: (S, Sp) matmul dtype | b: (1, Sp) f32 | o: (tm, Sp) f32
    x = x_ref[...].astype(w_ref.dtype)              # bf16 fast path: cast on VPU
    pre = jnp.dot(x, w_ref[...], preferred_element_type=jnp.float32) + b_ref[...]
    if approximate_gelu:
        act = jax.nn.gelu(pre, approximate=True)    # tanh -> EUP slot
    else:
        act = _gelu_exact(pre)                      # erf -> matches nn.GELU()
    o_ref[...] = act.astype(o_ref.dtype)


# ---------------------------------------------------------------------------
# One-time host-side parameter folding + padding + casting (exact algebra).
# ---------------------------------------------------------------------------
def prepare_params(raw, *, matmul_dtype=jnp.float32):
    """Fold both scalar filter branches AND both Linear layers into one affine map."""
    S = raw["W_mem"].shape[0]
    f32 = lambda a: jnp.asarray(a, jnp.float32)

    # mind = x @ wm_eff + bm_eff          (in_filter folded into memory)
    w_in = f32(raw["W_in"]).T                       # (S, 1)
    wm_x = f32(raw["W_mem"])[:, :S].T               # (S, S)
    wm_f = f32(raw["W_mem"])[:, S].reshape(1, S)    # (1, S)
    wm_eff = wm_x + w_in @ wm_f
    bm_eff = f32(raw["b_mem"]).reshape(1, S) + f32(raw["b_in"]).reshape(1, 1) * wm_f

    # pre = mind @ wg_eff + bg_eff        (out_filter folded into guard)
    w_out = f32(raw["W_out"]).T                     # (S, 1)
    wg_m = f32(raw["W_g"])[:, :S].T                 # (S, S)
    wg_g = f32(raw["W_g"])[:, S].reshape(1, S)      # (1, S)
    wg_eff = wg_m + w_out @ wg_g
    bg_eff = f32(raw["b_g"]).reshape(1, S) + f32(raw["b_out"]).reshape(1, 1) * wg_g

    # No nonlinearity between the two affine maps -> fold into ONE matmul.
    w_total = wm_eff @ wg_eff                       # (S, S)
    b_total = bm_eff @ wg_eff + bg_eff              # (1, S)

    # Pad only the output-feature (N / lane) axis to a multiple of 128 lanes.
    Sp = _round_up(max(S, 128), 128)
    w_pad = jnp.pad(w_total, ((0, 0), (0, Sp - S))).astype(matmul_dtype)
    b_pad = jnp.pad(b_total, ((0, 0), (0, Sp - S))).astype(jnp.float32)

    return dict(w=w_pad, b=b_pad, size=S)


# ---------------------------------------------------------------------------
# Wrapper: tile the batch, call the kernel. No per-call host work on params/x.
# ---------------------------------------------------------------------------
def memory_forward(x, prep, *, block_m=256, min_grid_steps=2, approximate_gelu=False):
    """x: (B, S) float array. prep: output of prepare_params()."""
    B, S = x.shape
    assert S == prep["size"]
    w, b = prep["w"], prep["b"]
    Sp = w.shape[1]
    mm_itemsize = jnp.dtype(w.dtype).itemsize

    # Batch tile: multiple of 8 sublanes; aim for >= min_grid_steps parallel
    # grid steps (v7x megacore) but never larger than block_m (v6e/v7x MXU M).
    tile_m = max(8, min(_round_up(block_m, 8),
                        _round_up(pl.cdiv(B, min_grid_steps), 8)))
    grid = (pl.cdiv(B, tile_m),)

    # Explicit VMEM budget: single-buffered weight/bias + double-buffered
    # x/out tiles + f32 pre-activation, with 2x headroom.
    resident = (
        w.size * mm_itemsize          # folded weight, Buffered(1)
        + b.size * 4                  # folded bias,   Buffered(1)
        + 2 * tile_m * S * 4          # x tiles (double-buffered, f32 in HBM)
        + 2 * tile_m * Sp * 4         # out tiles (double-buffered, f32)
        + tile_m * Sp * 4             # f32 pre-activation scratch
    )
    vmem_limit = int(min(max(2 * resident, 4 << 20), 128 << 20))

    cost = pl.CostEstimate(
        flops=2 * B * S * Sp,         # one (B,S)x(S,Sp) matmul
        transcendentals=B * Sp,       # erf/tanh in GELU
        bytes_accessed=(B * S * 4 + w.size * mm_itemsize + b.size * 4
                        + B * Sp * 4),
    )

    # TODO(synk): for very large S (weight not VMEM-resident even single-
    # buffered: ~1.8k f32 / ~2.5k bf16 against v7x's 64 MiB), add an inner grid
    # axis over the output-feature (N) dimension with the weight blocked as
    # (S, tn) while the x tile stays resident across that axis.

    out = pl.pallas_call(
        partial(memory_kernel, approximate_gelu=approximate_gelu),
        out_shape=jax.ShapeDtypeStruct((B, Sp), jnp.float32),
        grid_spec=pltpu.PrefetchScalarGridSpec(
            num_scalar_prefetch=0,
            grid=grid,
            in_specs=[
                pl.BlockSpec((tile_m, S), lambda i: (i, 0)),        # x tile (K = S)
                pl.BlockSpec((S, Sp), lambda i: (0, 0),
                             pipeline_mode=pl.Buffered(1)),         # folded weight
                pl.BlockSpec((1, Sp), lambda i: (0, 0),
                             pipeline_mode=pl.Buffered(1)),         # folded bias
            ],
            out_specs=pl.BlockSpec((tile_m, Sp), lambda i: (i, 0)),
        ),
        compiler_params=pltpu.CompilerParams(
            dimension_semantics=("parallel",),   # batch tiles shard across TCs
            vmem_limit_bytes=vmem_limit,
        ),
        cost_estimate=cost,
    )(x.astype(jnp.float32), w, b)

    return out[:, :S]


# ---------------------------------------------------------------------------
# Deterministic init matching PyTorch Linear shapes, and a pure-JAX reference.
# ---------------------------------------------------------------------------
def init_params(key, size):
    S = size
    ks = jax.random.split(key, 8)

    def unif(k, shape, fan_in):
        bound = 1.0 / math.sqrt(fan_in)
        return jax.random.uniform(k, shape, jnp.float32, -bound, bound)

    return dict(
        W_in=unif(ks[0], (1, S), S),            # in_filter.weight  (1, S)
        b_in=unif(ks[1], (1,), S),              # in_filter.bias    (1,)
        W_mem=unif(ks[2], (S, S + 1), S + 1),   # memory.weight     (S, S+1)
        b_mem=unif(ks[3], (S,), S + 1),         # memory.bias       (S,)
        W_out=unif(ks[4], (1, S), S),           # out_filter.weight (1, S)
        b_out=unif(ks[5], (1,), S),             # out_filter.bias   (1,)
        W_g=unif(ks[6], (S, S + 1), S + 1),     # guard.weight      (S, S+1)
        b_g=unif(ks[7], (S,), S + 1),           # guard.bias        (S,)
    )


def memory_reference(x, raw):
    """Pure-JAX reference mirroring the PyTorch forward, for validation."""
    f = x @ raw["W_in"].T + raw["b_in"]
    the_in = jnp.concatenate([x, f], axis=-1)
    mind = the_in @ raw["W_mem"].T + raw["b_mem"]
    g = mind @ raw["W_out"].T + raw["b_out"]
    the_out = jnp.concatenate([mind, g], axis=-1)
    pre = the_out @ raw["W_g"].T + raw["b_g"]
    return 0.5 * pre * (1.0 + lax.erf(pre / math.sqrt(2.0)))


if __name__ == "__main__":
    SIZE = 32     # module hidden size; lane axis zero-padded to 128 inside prep
    BATCH = 256   # -> two 128-row "parallel" grid steps (v7x megacore friendly)

    key = jax.random.PRNGKey(0)
    k_x, k_p = jax.random.split(key)
    x = jax.random.normal(k_x, (BATCH, SIZE), dtype=jnp.float32)

    raw = init_params(k_p, SIZE)
    ref = memory_reference(x, raw)

    # f32 matmul path (exact up to f32 rounding of the one-time weight fold).
    prep32 = prepare_params(raw, matmul_dtype=jnp.float32)
    out = jax.block_until_ready(memory_forward(x, prep32))
    assert out.shape == (BATCH, SIZE)
    assert jnp.allclose(out, ref, atol=1e-4, rtol=1e-4), "f32 mismatch vs reference"

    # bf16 matmul-operand path (valid on v5e/v6e/v7x), f32 accumulation + GELU.
    prep16 = prepare_params(raw, matmul_dtype=jnp.bfloat16)
    out16 = jax.block_until_ready(memory_forward(x, prep16))
    assert out16.shape == (BATCH, SIZE)
    assert float(jnp.max(jnp.abs(out16 - ref))) < 0.1, "bf16 path diverged"

    print("KERNEL_OK")
</pallas_src>

<mosaic_0001>
module attributes {stable_mosaic.version = 11 : i64} {
  func.func @memory_kernel(%arg0: i32, %arg1: memref<128x32xf32, #tpu.memory_space<vmem>>, %arg2: memref<32x128xf32, #tpu.memory_space<vmem>>, %arg3: memref<1x128xf32, #tpu.memory_space<vmem>>, %arg4: memref<128x128xf32, #tpu.memory_space<vmem>>) attributes {dimension_semantics = [#tpu.dimension_semantics<parallel>], iteration_bounds = array<i64: 2>, scalar_prefetch = 0 : i64, scratch_operands = 0 : i64, tpu.core_type = #tpu.core_type<tc>, window_params = [{transform_indices = @transform_0, window_bounds = array<i64: 128, 32>}, {pipeline_mode = #tpu.pipeline_mode<synchronous>, transform_indices = @transform_1, window_bounds = array<i64: 32, 128>}, {pipeline_mode = #tpu.pipeline_mode<synchronous>, transform_indices = @transform_2, window_bounds = array<i64: 1, 128>}, {transform_indices = @transform_3, window_bounds = array<i64: 128, 128>}]} {
    %c0 = arith.constant 0 : index
    %c0_0 = arith.constant 0 : index
    %0 = vector.load %arg1[%c0, %c0_0] : memref<128x32xf32, #tpu.memory_space<vmem>>, vector<128x32xf32>
    %c0_1 = arith.constant 0 : index
    %c0_2 = arith.constant 0 : index
    %1 = vector.load %arg2[%c0_1, %c0_2] : memref<32x128xf32, #tpu.memory_space<vmem>>, vector<32x128xf32>
    %cst = arith.constant dense<0.000000e+00> : vector<128x128xf32>
    %2 = tpu.matmul %0, %1, %cst {dimension_numbers = #tpu.dot_dimension_numbers<[1], [0], [0], [1], [0, 0, 1, 1], [], []>} : vector<128x32xf32>, vector<32x128xf32>, vector<128x128xf32> -> vector<128x128xf32>
    %c0_3 = arith.constant 0 : index
    %c0_4 = arith.constant 0 : index
    %3 = vector.load %arg3[%c0_3, %c0_4] : memref<1x128xf32, #tpu.memory_space<vmem>>, vector<1x128xf32>
    %4 = vector.broadcast %3 : vector<1x128xf32> to vector<128x128xf32>
    %5 = arith.addf %2, %4 : vector<128x128xf32>
    %cst_5 = arith.constant 5.000000e-01 : f32
    %6 = vector.broadcast %cst_5 : f32 to vector<128x128xf32>
    %7 = arith.mulf %6, %5 : vector<128x128xf32>
    %cst_6 = arith.constant 0.707106769 : f32
    %8 = vector.broadcast %cst_6 : f32 to vector<128x128xf32>
    %9 = arith.mulf %5, %8 : vector<128x128xf32>
    %10 = math.erf %9 : vector<128x128xf32>
    %cst_7 = arith.constant 1.000000e+00 : f32
    %11 = vector.broadcast %cst_7 : f32 to vector<128x128xf32>
    %12 = arith.addf %11, %10 : vector<128x128xf32>
    %13 = arith.mulf %7, %12 : vector<128x128xf32>
    %c0_8 = arith.constant 0 : index
    %c0_9 = arith.constant 0 : index
    %14 = vector.load %arg4[%c0_8, %c0_9] : memref<128x128xf32, #tpu.memory_space<vmem>>, vector<128x128xf32>
    tpu.vector_store %arg4[%c0_8, %c0_9], %13 {strides = array<i32>} : memref<128x128xf32, #tpu.memory_space<vmem>>, vector<128x128xf32>,
    return
  }
  func.func @transform_0(%arg0: i32) -> (i32, i32) {
    %c0_i32 = arith.constant 0 : i32
    %c0_i32_0 = arith.constant 0 : i32
    return %arg0, %c0_i32 : i32, i32
  }
  func.func @transform_1(%arg0: i32) -> (i32, i32) {
    %c0_i32 = arith.constant 0 : i32
    %c0_i32_0 = arith.constant 0 : i32
    %c0_i32_1 = arith.constant 0 : i32
    return %c0_i32, %c0_i32_0 : i32, i32
  }
  func.func @transform_2(%arg0: i32) -> (i32, i32) {
    %c0_i32 = arith.constant 0 : i32
    %c0_i32_0 = arith.constant 0 : i32
    %c0_i32_1 = arith.constant 0 : i32
    return %c0_i32, %c0_i32_0 : i32, i32
  }
  func.func @transform_3(%arg0: i32) -> (i32, i32) {
    %c0_i32 = arith.constant 0 : i32
    %c0_i32_0 = arith.constant 0 : i32
    return %arg0, %c0_i32 : i32, i32
  }
}

</mosaic_0001>

<bundles_post_ra>
// kernel: tpu_custom_call.1
= control target key start
LH: loop header
LB: loop body
LE: loop exit
PB: predicated region body
PF: predicated region fallthrough
CT: control target
= control target key end

     0   :  { %8 = vsyncpa [#allocation3], 0  ;;  %s1046_s0 = inlined_call_operand.vmem [shape: f32[256,32], index: 0, kind: input, shape index: {}]   ;;  %s1047_s1 = inlined_call_operand.vmem [shape: f32[32,128], index: 1, kind: input, shape index: {}]   ;;  %s1048_s2 = inlined_call_operand.vmem [shape: f32[1,128], index: 2, kind: input, shape index: {}]   ;;  %s1049_s3 = inlined_call_operand.hbm [shape: f32[256,128], index: 3, kind: output, shape index: {}]  }
   0x1   :  { %10 = vsyncpa [#allocation3 + $0x1], 0  ;;  %s813_s12 = smov 0   ;;  %s815_s13 = smov 0  }
   0x2   :  { %s817_s14 = smov 0   ;;  %s819_s15 = smov 0  }
   0x3 LB: > { %s834_s16 = sadd.s32 4294967295, %s788_s15   ;;  %s565_s17 = sadd.s32 4294967294, %s788_s15   ;;  %s788_s15 = sphi %s819_s15, %s1055_s15   ;;  %s784_s14 = sphi %s817_s14, %s1054_s14   ;;  %s780_s13 = sphi %s815_s13, %s1053_s13   ;;  %s776_s12 = sphi %s813_s12, %s1052_s12  }
   0x4   : > { %s838_s18 = sadd.s32 1, %s788_s15   ;;  %s91_s19 = sadd.s32 1, %s784_s14 }
   0x5   : > { %s88_s20 = ssub.s32 %s788_s15, %s838_s18  ;;  %p101_p0 = scmp.ne.s32.totalorder %s784_s14, %s780_s13 }
   0x6   : > { %p89_p1 = scmp.eq.s32.totalorder %s88_s20, 0  ;;  %p102_p2 = scmp.eq.s32.totalorder %s834_s16, 1 }
   0x7   : > { %p107_p3 = scmp.ne.s32.totalorder %s780_s13, %s776_s12  ;;  %p108_p4 = scmp.eq.s32.totalorder %s565_s17, 1 }
   0x8   : > { %s849_s21 = scalar_select %p89_p1, %s784_s14, %s91_s19  }
   0x9   : > { %p851_p5 = por %p102_p2, %p101_p0  ;;  %p855_p6 = por %p108_p4, %p107_p3 }
   0xa   : > { %p568_p7 = scmp.ge.s32.totalorder %s788_s15, 1  ;;  %p141_p8 = scmp.lt.s32.totalorder %s788_s15, 3 }
   0xc   : > { %p142_p9 = pnand %p568_p7, %p141_p8 }
   0xd   : > { %s570_s28 = sshll.u32 (!%p142_p9), %s834_s16, 4  ;;  %s162_s17 = sand.u32 (!%p142_p9), 1, %s780_s13  }
   0xe   : > { %145 = sbr.rel (%p142_p9) target bundleno = 273 (0x111), region = 32  ;;  %p166_p10 = scmp.lt.s32.totalorder (!%p142_p9), %s570_s28, 31 }
   0xf   : > { %s569_s19 = sshll.u32 (!%p142_p9), %s162_s17, 7  ;;  %s594_s24 = sshll.u32 (!%p142_p9), %s834_s16, 11 }
  0x10   : > { %s964_s20 = scalar_lea.vmem (!%p142_p9), [#allocation2], %s569_s19  ;;  %s998_s16 = scalar_lea.hbm (!%p142_p9), %s1049_s3, %s594_s24 }
  0x11   : > { %s503_s25 = sshll.u32 (!%p142_p9), %s964_s20, 4  ;;  %s790_s30 = smov (!%p142_p9), [#allocation2]   ;;  %s1000_s25 = int_to_ptr.vmem [resolvable:$true] %s503_s25 }
  0x12   : > { %s728_s29 = scalar_lea.vmem (!%p142_p9), %s1000_s25, 2048  ;;  %s732_s4 = sshll.u32 (!%p142_p9), %s790_s30, 4  ;;  %s733_s4 = int_to_ptr.vmem [resolvable:$false] %s732_s4 }
  0x13   : > { %v191_v0 = vld [vmem:[%s1047_s1 + $0x18] sm:$0xff]  ;;  %v190_v1 = vld [vmem:[%s1047_s1 + $0x10] sm:$0xff]  ;;  %v189_v2 = vld [vmem:[%s1047_s1 + $0x8] sm:$0xff]  ;;  %s1057_s28 = smov (!%p166_p10, %s570_s28), 31  ;;  %vm199_vm0 = vcmask 261120   ;;  %p729_p11 = scmp.ne.s32.totalorder %s1000_s25, %s728_s29 }
  0x14   : > { %615 = vmatprep.subr.mxu0 %v191_v0  ;;  %647 = vmatprep.subr.mxu1 %v191_v0  ;;  %v188_v3 = vld [vmem:[%s1047_s1] sm:$0xff]  ;;  %s571_s6 = sshll.u32 %s1057_s28, 3  ;;  %s1006_s28 = scalar_lea.sflag [#allocation3], %s162_s17 }
  0x15   : > { %616 = vmatpush3.msra.mxu0 %v191_v0  ;;  %651 = vmatpush3.msra.mxu1 %v191_v0  ;;  %s877_s9 = scalar_lea.vmem %s1046_s0, %s571_s6  ;;  %v572_v20 = vld [vmem:[%s1048_s2] ss:$0 sm:$0xff]  ;;  %p730_p12 = pnand %p729_p11, %p851_p5 }
  0x16   : > { %617 = vmatprep.subr.mxu0 %v190_v1  ;;  %648 = vmatprep.subr.mxu1 %v190_v1  ;;  %v172_v4 = vld [vmem:[%s877_s9] sm:$0xff]  ;;  %v173_v6 = vld [vmem:[%s877_s9 + $0x8] sm:$0xff]  ;;  %v174_v8 = vld [vmem:[%s877_s9 + $0x10] sm:$0xff]  ;;  %s734_s5 = scalar_lea.vmem %s733_s4, 4096  ;;  %p735_p0 = scmp.lt.s32.totalorder %s1000_s25, %s733_s4 }
  0x17   : > { %618 = vmatpush3.msra.mxu0 %v190_v1  ;;  %652 = vmatpush3.msra.mxu1 %v190_v1  ;;  %v180_v5 = vld [vmem:[%s877_s9 + $0x40] sm:$0xff]  ;;  %v181_v7 = vld [vmem:[%s877_s9 + $0x48] sm:$0xff]  ;;  %v182_v9 = vld [vmem:[%s877_s9 + $0x50] sm:$0xff]  ;;  %p731_p13 = pneg %p730_p12  ;;  %p736_p1 = scmp.lt.s32.totalorder %s734_s5, %s728_s29 }
  0x18   : > { %619 = vmatprep.subr.mxu0 %v189_v2  ;;  %649 = vmatprep.subr.mxu1 %v189_v2  ;;  %v175_v10 = vld [vmem:[%s877_s9 + $0x18] sm:$0xff]  ;;  %v176_v12 = vld [vmem:[%s877_s9 + $0x20] sm:$0xff]  ;;  %v177_v14 = vld [vmem:[%s877_s9 + $0x28] sm:$0xff] }
  0x19   : > { %620 = vmatpush3.msra.mxu0 %v189_v2  ;;  %653 = vmatpush3.msra.mxu1 %v189_v2  ;;  %v183_v11 = vld [vmem:[%s877_s9 + $0x58] sm:$0xff]  ;;  %v184_v13 = vld [vmem:[%s877_s9 + $0x60] sm:$0xff]  ;;  %v185_v15 = vld [vmem:[%s877_s9 + $0x68] sm:$0xff]  ;;  %p737_p2 = por %p736_p1, %p735_p0 }
  0x1a   : > { %621 = vmatprep.subr.mxu0 %v188_v3  ;;  %650 = vmatprep.subr.mxu1 %v188_v3  ;;  %v178_v16 = vld [vmem:[%s877_s9 + $0x30] sm:$0xff]  ;;  %v179_v18 = vld [vmem:[%s877_s9 + $0x38] sm:$0xff] }
  0x1b   : > { %622 = vmatpush3.msra.mxu0 %v188_v3  ;;  %654 = vmatpush3.msra.mxu1 %v188_v3  ;;  %v186_v17 = vld [vmem:[%s877_s9 + $0x70] sm:$0xff]  ;;  %v187_v19 = vld [vmem:[%s877_s9 + $0x78] sm:$0xff]  ;;  %p738_p3 = pnand %p737_p2, %p731_p13 }
  0x1c   : > { %623 = vmatprep.mubr.msk.f32.mxu0 %vm199_vm0, %v172_v4  ;;  %635 = vmatprep.mubr.msk.f32.mxu1 %vm199_vm0, %v180_v5 }
  0x1d   : > { %624 = vmatmul.mubr.msk.f32.vlgmr.msra.gmra.mxu0 %vm199_vm0, %v173_v6  ;;  %636 = vmatmul.mubr.msk.f32.vlgmr.msra.gmra.mxu1 %vm199_vm0, %v181_v7 }
  0x1e   : > { %626 = vmatprep.mubr.msk.f32.mxu0 %vm199_vm0, %v174_v8  ;;  %638 = vmatprep.mubr.msk.f32.mxu1 %vm199_vm0, %v182_v9 }
  0x21   : > { %627 = vmatmul.mubr.msk.f32.gmra.mxu0 %vm199_vm0, %v175_v10  ;;  %639 = vmatmul.mubr.msk.f32.gmra.mxu1 %vm199_vm0, %v183_v11 }
  0x22   : > { %629 = vmatprep.mubr.msk.f32.mxu0 %vm199_vm0, %v176_v12  ;;  %641 = vmatprep.mubr.msk.f32.mxu1 %vm199_vm0, %v184_v13 }
  0x25   : > { %630 = vmatmul.mubr.msk.f32.gmra.mxu0 %vm199_vm0, %v177_v14  ;;  %642 = vmatmul.mubr.msk.f32.gmra.mxu1 %vm199_vm0, %v185_v15 }
  0x26   : > { %632 = vmatprep.mubr.msk.f32.mxu0 %vm199_vm0, %v178_v16  ;;  %644 = vmatprep.mubr.msk.f32.mxu1 %vm199_vm0, %v186_v17 }
  0x29   : > { %633 = vmatmul.mubr.msk.f32.gmra.mxu0 %vm199_vm0, %v179_v18  ;;  %645 = vmatmul.mubr.msk.f32.gmra.mxu1 %vm199_vm0, %v187_v19 }
  0xdd   : > { %v625_v21 = vpop.f32.mrf.mxu0  ;;  %v637_v22 = vpop.f32.mrf.mxu1 }
  0xde   : > { %v320_v23 = vadd.f32 %v625_v21, %v572_v20  ;;  %v914_v24 = vadd.f32 %v637_v22, %v572_v20 }
  0xdf   : > { %v314_v25 = vpop.f32.mrf.mxu0  ;;  %v354_v26 = vpop.f32.mrf.mxu1 }
  0xe0   : > { %v410_v27 = vmul.f32 0.70710677, %v320_v23  ;;  %v418_v28 = vmul.f32 0.70710677, %v914_v24  ;;  %v917_v29 = vadd.f32 %v572_v20, %v314_v25  ;;  %v919_v30 = vadd.f32 %v572_v20, %v354_v26 }
  0xe1   : > { %v628_v31 = vpop.f32.mrf.mxu0  ;;  %v640_v32 = vpop.f32.mrf.mxu1  ;;  %v394_v5 = vmul.f32 0.5, %v320_v23  ;;  %v402_v8 = vmul.f32 0.5, %v914_v24 }
  0xe2   : > { %696 = verf.f32 %v410_v27  ;;  %v921_v33 = vadd.f32 %v628_v31, %v572_v20  ;;  %v923_v34 = vadd.f32 %v640_v32, %v572_v20  ;;  %v409_v35 = vmul.f32 0.70710677, %v917_v29 }
  0xe3   : > { %698 = verf.f32 %v418_v28  ;;  %v324_v36 = vpop.f32.mrf.mxu0  ;;  %v364_v37 = vpop.f32.mrf.mxu1  ;;  %v417_v38 = vmul.f32 0.70710677, %v919_v30  ;;  %v393_v15 = vmul.f32 0.5, %v917_v29  ;;  %v401_v18 = vmul.f32 0.5, %v919_v30 }
  0xe4   : > { %v412_v39 = vmul.f32 0.70710677, %v921_v33  ;;  %700 = verf.f32 %v409_v35  ;;  %v420_v40 = vmul.f32 0.70710677, %v923_v34  ;;  %v929_v41 = vadd.f32 %v572_v20, %v324_v36 }
  0xe5   : > { %v931_v42 = vadd.f32 %v572_v20, %v364_v37  ;;  %v631_v43 = vpop.f32.mrf.mxu0  ;;  %v643_v44 = vpop.f32.mrf.mxu1  ;;  %702 = verf.f32 %v417_v38  ;;  %v396_v22 = vmul.f32 0.5, %v921_v33  ;;  %v404_v26 = vmul.f32 0.5, %v923_v34 }
  0xe6   : > { %v933_v45 = vadd.f32 %v631_v43, %v572_v20  ;;  %v935_v46 = vadd.f32 %v643_v44, %v572_v20  ;;  %704 = verf.f32 %v412_v39  ;;  %v411_v47 = vmul.f32 0.70710677, %v929_v41 }
  0xe7   : > { %v334_v48 = vpop.f32.mrf.mxu0  ;;  %v374_v49 = vpop.f32.mrf.mxu1  ;;  %706 = verf.f32 %v420_v40  ;;  %v419_v50 = vmul.f32 0.70710677, %v931_v42  ;;  %v395_v30 = vmul.f32 0.5, %v929_v41  ;;  %v403_v33 = vmul.f32 0.5, %v931_v42 }
  0xe8   : > { %v414_v51 = vmul.f32 0.70710677, %v933_v45  ;;  %708 = verf.f32 %v411_v47  ;;  %v422_v52 = vmul.f32 0.70710677, %v935_v46  ;;  %v941_v53 = vadd.f32 %v572_v20, %v334_v48 }
  0xe9   : > { %v634_v54 = vpop.f32.mrf.mxu0  ;;  %v646_v55 = vpop.f32.mrf.mxu1  ;;  %710 = verf.f32 %v419_v50  ;;  %v943_v56 = vadd.f32 %v572_v20, %v374_v49  ;;  %v398_v34 = vmul.f32 0.5, %v933_v45  ;;  %v406_v41 = vmul.f32 0.5, %v935_v46 }
  0xea   : > { %v945_v57 = vadd.f32 %v634_v54, %v572_v20  ;;  %v947_v58 = vadd.f32 %v646_v55, %v572_v20  ;;  %712 = verf.f32 %v414_v51  ;;  %v413_v59 = vmul.f32 0.70710677, %v941_v53 }
  0xeb   : > { %v344_v60 = vpop.f32.mrf.mxu0  ;;  %v384_v61 = vpop.f32.mrf.mxu1  ;;  %714 = verf.f32 %v422_v52  ;;  %v421_v62 = vmul.f32 0.70710677, %v943_v56  ;;  %v397_v42 = vmul.f32 0.5, %v941_v53  ;;  %v405_v51 = vmul.f32 0.5, %v943_v56 }
  0xec   : > { %716 = verf.f32 %v413_v59  ;;  %v416_v63 = vmul.f32 0.70710677, %v945_v57  ;;  %v424_v0 = vmul.f32 0.70710677, %v947_v58  ;;  %v956_v1 = vadd.f32 %v572_v20, %v344_v60 }
  0xed   : > { %718 = verf.f32 %v421_v62  ;;  %v958_v2 = vadd.f32 %v572_v20, %v384_v61  ;;  %v400_v55 = vmul.f32 0.5, %v945_v57  ;;  %v408_v60 = vmul.f32 0.5, %v947_v58 }
  0xee   : > { %720 = verf.f32 %v416_v63  ;;  %v415_v7 = vmul.f32 0.70710677, %v956_v1  ;;  %v399_v57 = vmul.f32 0.5, %v956_v1 }
  0xef   : > { %v697_v3 = vpop.eup %696  ;;  %722 = verf.f32 %v424_v0  ;;  %v423_v10 = vmul.f32 0.70710677, %v958_v2 }
  0xf0   : > { %v699_v4 = vpop.eup %698  ;;  %v442_v6 = vadd.f32 1.0, %v697_v3  ;;  %724 = verf.f32 %v415_v7 }
  0xf1   : > { %v450_v9 = vadd.f32 1.0, %v699_v4  ;;  %v701_v11 = vpop.eup %700  ;;  %726 = verf.f32 %v423_v10  ;;  %v407_v4 = vmul.f32 0.5, %v958_v2 }
  0xf2   : > { %v458_v12 = vmul.f32 %v442_v6, %v394_v5  ;;  %v703_v13 = vpop.eup %702  ;;  %v441_v16 = vadd.f32 1.0, %v701_v11 }
  0xf3   : > { %v466_v14 = vmul.f32 %v450_v9, %v402_v8  ;;  %v705_v17 = vpop.eup %704  ;;  %v449_v19 = vadd.f32 1.0, %v703_v13 }
  0xf4   : > { %474 = vst [vmem:[%s964_s20 + $0x8] sm:$0xff] %v458_v12  ;;  %v707_v20 = vpop.eup %706  ;;  %v457_v21 = vmul.f32 %v441_v16, %v393_v15  ;;  %v444_v23 = vadd.f32 1.0, %v705_v17 }
  0xf5   : > { %482 = vst [vmem:[%s964_s20 + $0x48] sm:$0xff] %v466_v14  ;;  %v709_v24 = vpop.eup %708  ;;  %v465_v25 = vmul.f32 %v449_v19, %v401_v18  ;;  %v452_v27 = vadd.f32 1.0, %v707_v20 }
  0xf6   : > { %v711_v28 = vpop.eup %710  ;;  %473 = vst [vmem:[%s964_s20] sm:$0xff] %v457_v21  ;;  %v460_v29 = vmul.f32 %v444_v23, %v396_v22  ;;  %v443_v31 = vadd.f32 1.0, %v709_v24 }
  0xf7   : > { %v713_v32 = vpop.eup %712  ;;  %481 = vst [vmem:[%s964_s20 + $0x40] sm:$0xff] %v465_v25  ;;  %v468_v35 = vmul.f32 %v452_v27, %v404_v26  ;;  %v451_v36 = vadd.f32 1.0, %v711_v28 }
  0xf8   : > { %v715_v37 = vpop.eup %714  ;;  %476 = vst [vmem:[%s964_s20 + $0x18] sm:$0xff] %v460_v29  ;;  %v459_v38 = vmul.f32 %v443_v31, %v395_v30  ;;  %v446_v39 = vadd.f32 1.0, %v713_v32 }
  0xf9   : > { %v717_v40 = vpop.eup %716  ;;  %484 = vst [vmem:[%s964_s20 + $0x58] sm:$0xff] %v468_v35  ;;  %v467_v43 = vmul.f32 %v451_v36, %v403_v33  ;;  %v454_v44 = vadd.f32 1.0, %v715_v37 }
  0xfa   : > { %v719_v47 = vpop.eup %718  ;;  %475 = vst [vmem:[%s964_s20 + $0x10] sm:$0xff] %v459_v38  ;;  %v462_v48 = vmul.f32 %v446_v39, %v398_v34  ;;  %v445_v49 = vadd.f32 1.0, %v717_v40 }
  0xfb   : > { %v721_v50 = vpop.eup %720  ;;  %483 = vst [vmem:[%s964_s20 + $0x50] sm:$0xff] %v467_v43  ;;  %v470_v45 = vmul.f32 %v454_v44, %v406_v41  ;;  %v453_v52 = vadd.f32 1.0, %v719_v47 }
  0xfc   : > { %v723_v54 = vpop.eup %722  ;;  %478 = vst [vmem:[%s964_s20 + $0x28] sm:$0xff] %v462_v48  ;;  %v461_v46 = vmul.f32 %v445_v49, %v397_v42  ;;  %v448_v59 = vadd.f32 1.0, %v721_v50 }
  0xfd   : > { %486 = vst [vmem:[%s964_s20 + $0x68] sm:$0xff] %v470_v45  ;;  %v469_v53 = vmul.f32 %v453_v52, %v405_v51  ;;  %v456_v61 = vadd.f32 1.0, %v723_v54  ;;  %v725_v62 = vpop.eup %724 }
  0xfe   : > { %477 = vst [vmem:[%s964_s20 + $0x20] sm:$0xff] %v461_v46  ;;  %v464_v63 = vmul.f32 %v448_v59, %v400_v55  ;;  %v727_v56 = vpop.eup %726  ;;  %v447_v3 = vadd.f32 1.0, %v725_v62 }
  0xff   : > { %485 = vst [vmem:[%s964_s20 + $0x60] sm:$0xff] %v469_v53  ;;  %v472_v0 = vmul.f32 %v456_v61, %v408_v60  ;;  %v455_v58 = vadd.f32 1.0, %v727_v56 }
 0x100   : > { %480 = vst [vmem:[%s964_s20 + $0x38] sm:$0xff] %v464_v63  ;;  %v463_v5 = vmul.f32 %v447_v3, %v399_v57 }
 0x101   : > { %488 = vst [vmem:[%s964_s20 + $0x78] sm:$0xff] %v472_v0  ;;  %v471_v6 = vmul.f32 %v455_v58, %v407_v4 }
 0x102   : > { %479 = vst [vmem:[%s964_s20 + $0x30] sm:$0xff] %v463_v5 }
 0x103   : > { %487 = vst [vmem:[%s964_s20 + $0x70] sm:$0xff] %v471_v6 }
 0x104   : > { %741 = shalt.err (!%p738_p3)
}
 0x105   : > { %s742_s6 = scalar_lea.hbm %s998_s16, 2048  ;;  %s746_s9 = scalar_lea.hbm %s1049_s3, 4096 }
 0x106   : > { %p743_p4 = scmp.ne.s32.totalorder %s998_s16, %s742_s6  ;;  %p747_p9 = scmp.lt.s32.totalorder %s998_s16, %s1049_s3 }
 0x107   : > { %p748_p10 = scmp.lt.s32.totalorder %s746_s9, %s742_s6 }
 0x108   : > { %p744_p7 = pnand %p743_p4, %p851_p5 }
 0x109   : > { %p749_p11 = por %p748_p10, %p747_p9 }
 0x10a   : > { %p745_p8 = pneg %p744_p7 }
 0x10c   : > { %p750_p12 = pnand %p749_p11, %p745_p8 }
 0x10e   : > { %753 = shalt.err (!%p750_p12)
}
 0x10f   : > { %s791_s17 = smov 128   ;;  %s792_s19 = smov 8  }
 0x110   : > { %655 = dma.vmem_to_hbm [thread:$0]  (%p851_p5), %s1000_s25, 2048, %s998_s16, %s1006_s28, %s791_s17, %s791_s17, %s792_s19  }
 0x111 PF: > { %p661_p13 = scmp.ge.s32.totalorder %s788_s15, 2  ;;  %s518_s20 = sand.u32 1, %s776_s12  }
 0x112   : > { %s519_s24 = scalar_lea.sflag [#allocation3], %s518_s20 }
 0x113   : > { %p658_p0 = pnand %p661_p13, %p855_p6 }
 0x115   : > { %p659_p1 = pneg %p658_p0 }
 0x117   : > { %771 = dma.done.wait (%p659_p1), %s519_s24, 2048  }
 0x118   : > { %773 = vsyncadd (%p659_p1), %s519_s24, 4294965248  ;;  %p13_p2 = scmp.ge.s32.totalorder %s838_s18, 4   ;;  %s1052_s12 = smov %s780_s13 }
 0x119   : > { %s1053_s13 = smov %s784_s14  ;;  %s1054_s14 = smov %s849_s21 }
 0x11a   : > { %s1055_s15 = smov %s838_s18  ;;  %15 = sbr.rel (!%p13_p2) target bundleno = 3 (0x3), region = 67 }
 0x11f   :  { %524 = vsyncpa [#allocation3], 1 }
 0x120   :  { %526 = vsyncpa [#allocation3 + $0x1], 1 }

</bundles_post_ra>
